<compile_context>
chip_gen: v5e
topology: v5e:2x2
jax: 0.10.0
libtpu: 0.0.40
codegen_flags: <defaults>
</compile_context>

<pallas_src>
import functools

import jax
import jax.numpy as jnp
from jax.experimental import pallas as pl
from jax.experimental.pallas import tpu as pltpu


def _round_up(n, m):
    return ((n + m - 1) // m) * m


def _unit_max(y, num_units, o_pad):
    """Max over unit-major, lane-aligned slices of y: (TB, U*O_pad) -> (TB, O_pad)."""
    m = y[:, :o_pad]
    for u in range(1, num_units):
        m = jnp.maximum(m, y[:, u * o_pad:(u + 1) * o_pad])
    return m


def _maxout_kernel_1step(x_ref, w_ref, b_ref, o_ref, *, num_units, o_pad):
    """Single K step: x_ref (TB, K); w_ref (K, U*O_pad); b_ref (1, U*O_pad);
    o_ref (TB, O_pad).  No scratch, no pl.when."""
    y = jnp.dot(x_ref[...], w_ref[...], preferred_element_type=jnp.float32)
    y = y + b_ref[...].astype(jnp.float32)
    o_ref[...] = _unit_max(y, num_units, o_pad).astype(o_ref.dtype)


def _maxout_kernel_ktiled(x_ref, w_ref, b_ref, o_ref, acc_ref, *, num_units, o_pad):
    """K-reduction path: x_ref (TB, TK); w_ref (TK, U*O_pad); b_ref (1, U*O_pad);
    o_ref (TB, O_pad); acc_ref (TB, U*O_pad) f32 scratch."""
    k = pl.program_id(1)

    @pl.when(k == 0)
    def _():
        acc_ref[...] = jnp.zeros_like(acc_ref)

    # One wide matmul covering all maxout units at once (f32 accumulation).
    acc_ref[...] += jnp.dot(x_ref[...], w_ref[...],
                            preferred_element_type=jnp.float32)

    @pl.when(k == pl.num_programs(1) - 1)
    def _():
        y = acc_ref[...] + b_ref[...].astype(jnp.float32)   # (TB, U*O_pad)
        o_ref[...] = _unit_max(y, num_units, o_pad).astype(o_ref.dtype)


def prepare_maxout_params(weight, bias, out_features, num_units, *,
                          tile_k=512, single_step_max_k=1024, use_bf16=False):
    """Rearrange PyTorch nn.Linear params once (hoisted out of the forward path).

    weight: (out_features*num_units, in_features)  -- torch layout
    bias:   (out_features*num_units,)
    Returns (w_slab, b_slab, meta) with
      w_slab[k, u*O_pad + o] = weight[o*num_units + u, k]   (K- and O-padded)
      b_slab[0, u*O_pad + o] = bias[o*num_units + u]
    """
    O, U = out_features, num_units
    OU, K = weight.shape
    assert OU == O * U and bias.shape == (OU,)
    assert tile_k % 128 == 0

    O_pad = _round_up(O, 128)
    if K <= max(tile_k, single_step_max_k):
        tile_k_eff, K_pad = K, K          # single K step, no K padding
    else:
        tile_k_eff, K_pad = tile_k, _round_up(K, tile_k)

    # weight[o*U + u, k]  ->  slab[k, u*O_pad + o]
    w3 = weight.reshape(O, U, K).transpose(2, 1, 0)            # (K, U, O)
    w3 = jnp.pad(w3, ((0, K_pad - K), (0, 0), (0, O_pad - O)))
    w_slab = w3.reshape(K_pad, U * O_pad)
    if use_bf16:
        w_slab = w_slab.astype(jnp.bfloat16)

    b2 = jnp.pad(bias.reshape(O, U).T, ((0, 0), (0, O_pad - O)))  # (U, O_pad)
    b_slab = b2.reshape(1, U * O_pad).astype(jnp.float32)

    meta = dict(out_features=O, num_units=U, o_pad=O_pad,
                k=K, k_pad=K_pad, tile_k=tile_k_eff, use_bf16=use_bf16)
    return w_slab, b_slab, meta


def maxout_forward(x, w_slab, b_slab, meta, *, tile_b=128):
    """Pallas Maxout forward.  x: (B, in_features) -> (B, out_features)."""
    B, K = x.shape
    assert K == meta["k"]
    O, U = meta["out_features"], meta["num_units"]
    O_pad, K_pad, tile_k = meta["o_pad"], meta["k_pad"], meta["tile_k"]
    N = U * O_pad
    out_dtype = x.dtype

    # Batch tile: up to `tile_b`, rounded to a sublane multiple; pad B up to it.
    tile_b_eff = min(tile_b, _round_up(B, 8))
    B_pad = _round_up(B, tile_b_eff)

    x_p = x.astype(jnp.bfloat16) if meta["use_bf16"] else x
    if B_pad != B or K_pad != K:
        x_p = jnp.pad(x_p, ((0, B_pad - B), (0, K_pad - K)))

    n_bt = B_pad // tile_b_eff
    n_kt = pl.cdiv(K_pad, tile_k)

    if n_kt == 1:
        # Fast path: one K step -> no scratch accumulator, no pl.when, 1-D grid.
        kernel = functools.partial(_maxout_kernel_1step, num_units=U, o_pad=O_pad)
        grid = (n_bt,)
        in_specs = [
            pl.BlockSpec((tile_b_eff, K_pad), lambda i: (i, 0)),   # x tile
            pl.BlockSpec((K_pad, N), lambda i: (0, 0)),            # fused weight slab
            pl.BlockSpec((1, N), lambda i: (0, 0)),                # bias slab
        ]
        out_specs = pl.BlockSpec((tile_b_eff, O_pad), lambda i: (i, 0))
        scratch_shapes = []
        dim_sem = ("parallel",)
    else:
        kernel = functools.partial(_maxout_kernel_ktiled, num_units=U, o_pad=O_pad)
        grid = (n_bt, n_kt)
        in_specs = [
            pl.BlockSpec((tile_b_eff, tile_k), lambda i, k: (i, k)),  # x tile
            pl.BlockSpec((tile_k, N), lambda i, k: (k, 0)),           # fused weight slab
            pl.BlockSpec((1, N), lambda i, k: (0, 0)),                # bias slab
        ]
        out_specs = pl.BlockSpec((tile_b_eff, O_pad), lambda i, k: (i, 0))
        scratch_shapes = [pltpu.VMEM((tile_b_eff, N), jnp.float32)]
        dim_sem = ("parallel", "arbitrary")

    out = pl.pallas_call(
        kernel,
        out_shape=jax.ShapeDtypeStruct((B_pad, O_pad), out_dtype),
        grid_spec=pltpu.PrefetchScalarGridSpec(
            num_scalar_prefetch=0,
            grid=grid,
            in_specs=in_specs,
            out_specs=out_specs,
            scratch_shapes=scratch_shapes,
        ),
        compiler_params=pltpu.CompilerParams(
            dimension_semantics=dim_sem,
            vmem_limit_bytes=48 * 1024 * 1024,   # safe on v5e/v6e (128 MiB) and v7x (64 MiB)
        ),
    )(x_p, w_slab, b_slab)

    return out[:B, :O]


def maxout_reference(x, weight, bias, out_features, num_units):
    """Pure-JAX reference mirroring the PyTorch forward exactly."""
    y = x @ weight.T + bias
    y = y.reshape(x.shape[0], out_features, num_units)
    return y.max(axis=-1)


def _make_params(key, in_features, out_features, num_units):
    kw, kb = jax.random.split(key)
    bound = 1.0 / jnp.sqrt(jnp.float32(in_features))
    weight = jax.random.uniform(
        kw, (out_features * num_units, in_features),
        minval=-bound, maxval=bound, dtype=jnp.float32)
    bias = jax.random.uniform(
        kb, (out_features * num_units,),
        minval=-bound, maxval=bound, dtype=jnp.float32)
    return weight, bias


if __name__ == "__main__":
    key = jax.random.PRNGKey(0)
    k1, k2, k3 = jax.random.split(key, 3)

    # --- Test 1: small shapes (Maxout(in=32, out=16, units=4)); single-K fast path ---
    B, K, O, U = 16, 32, 16, 4
    x = jax.random.normal(k1, (B, K), dtype=jnp.float32)
    weight, bias = _make_params(k2, K, O, U)

    w_slab, b_slab, meta = prepare_maxout_params(weight, bias, O, U)
    out = jax.block_until_ready(maxout_forward(x, w_slab, b_slab, meta))
    ref = maxout_reference(x, weight, bias, O, U)
    assert out.shape == (B, O)
    assert jnp.allclose(out, ref, atol=1e-4, rtol=1e-4), "Maxout mismatch (small)"

    # --- Test 2: exercises batch padding + K-reduction tiling + O padding ---
    B2, K2, O2, U2 = 200, 1664, 48, 3
    x2 = jax.random.normal(k3, (B2, K2), dtype=jnp.float32)
    weight2, bias2 = _make_params(k2, K2, O2, U2)

    w_slab2, b_slab2, meta2 = prepare_maxout_params(weight2, bias2, O2, U2, tile_k=512)
    out2 = jax.block_until_ready(maxout_forward(x2, w_slab2, b_slab2, meta2, tile_b=128))
    ref2 = maxout_reference(x2, weight2, bias2, O2, U2)
    assert out2.shape == (B2, O2)
    assert jnp.allclose(out2, ref2, atol=1e-3, rtol=1e-3), "Maxout mismatch (tiled)"

    # --- Test 3: optional bf16 matmul path (f32 accumulation) ---
    w_slab3, b_slab3, meta3 = prepare_maxout_params(weight2, bias2, O2, U2,
                                                    tile_k=512, use_bf16=True)
    out3 = jax.block_until_ready(maxout_forward(x2, w_slab3, b_slab3, meta3, tile_b=128))
    assert jnp.allclose(out3, ref2, atol=1e-1, rtol=1e-1), "Maxout mismatch (bf16)"

    print("KERNEL_OK")
</pallas_src>

<mosaic_0001>
module attributes {stable_mosaic.version = 11 : i64} {
  func.func @_maxout_kernel_1step(%arg0: i32, %arg1: memref<16x32xf32, #tpu.memory_space<vmem>>, %arg2: memref<32x512xf32, #tpu.memory_space<vmem>>, %arg3: memref<1x512xf32, #tpu.memory_space<vmem>>, %arg4: memref<16x128xf32, #tpu.memory_space<vmem>>) attributes {dimension_semantics = [#tpu.dimension_semantics<parallel>], iteration_bounds = array<i64: 1>, scalar_prefetch = 0 : i64, scratch_operands = 0 : i64, tpu.core_type = #tpu.core_type<tc>, window_params = [{transform_indices = @transform_0, window_bounds = array<i64: 16, 32>}, {pipeline_mode = #tpu.pipeline_mode<synchronous>, transform_indices = @transform_1, window_bounds = array<i64: 32, 512>}, {pipeline_mode = #tpu.pipeline_mode<synchronous>, transform_indices = @transform_2, window_bounds = array<i64: 1, 512>}, {transform_indices = @transform_3, window_bounds = array<i64: 16, 128>}]} {
    %c0 = arith.constant 0 : index
    %c0_0 = arith.constant 0 : index
    %0 = vector.load %arg1[%c0, %c0_0] : memref<16x32xf32, #tpu.memory_space<vmem>>, vector<16x32xf32>
    %c0_1 = arith.constant 0 : index
    %c0_2 = arith.constant 0 : index
    %1 = vector.load %arg2[%c0_1, %c0_2] : memref<32x512xf32, #tpu.memory_space<vmem>>, vector<32x512xf32>
    %cst = arith.constant dense<0.000000e+00> : vector<16x512xf32>
    %2 = tpu.matmul %0, %1, %cst {dimension_numbers = #tpu.dot_dimension_numbers<[1], [0], [0], [1], [0, 0, 1, 1], [], []>} : vector<16x32xf32>, vector<32x512xf32>, vector<16x512xf32> -> vector<16x512xf32>
    %c0_3 = arith.constant 0 : index
    %c0_4 = arith.constant 0 : index
    %3 = vector.load %arg3[%c0_3, %c0_4] : memref<1x512xf32, #tpu.memory_space<vmem>>, vector<1x512xf32>
    %4 = vector.broadcast %3 : vector<1x512xf32> to vector<16x512xf32>
    %5 = arith.addf %2, %4 : vector<16x512xf32>
    %6 = vector.extract_strided_slice %5 {offsets = [0, 0], sizes = [16, 128], strides = [1, 1]} : vector<16x512xf32> to vector<16x128xf32>
    %7 = vector.extract_strided_slice %5 {offsets = [0, 128], sizes = [16, 128], strides = [1, 1]} : vector<16x512xf32> to vector<16x128xf32>
    %8 = arith.maximumf %6, %7 : vector<16x128xf32>
    %9 = vector.extract_strided_slice %5 {offsets = [0, 256], sizes = [16, 128], strides = [1, 1]} : vector<16x512xf32> to vector<16x128xf32>
    %10 = arith.maximumf %8, %9 : vector<16x128xf32>
    %11 = vector.extract_strided_slice %5 {offsets = [0, 384], sizes = [16, 128], strides = [1, 1]} : vector<16x512xf32> to vector<16x128xf32>
    %12 = arith.maximumf %10, %11 : vector<16x128xf32>
    %c0_5 = arith.constant 0 : index
    %c0_6 = arith.constant 0 : index
    %13 = vector.load %arg4[%c0_5, %c0_6] : memref<16x128xf32, #tpu.memory_space<vmem>>, vector<16x128xf32>
    tpu.vector_store %arg4[%c0_5, %c0_6], %12 {strides = array<i32>} : memref<16x128xf32, #tpu.memory_space<vmem>>, vector<16x128xf32>,
    return
  }
  func.func @transform_0(%arg0: i32) -> (i32, i32) {
    %c0_i32 = arith.constant 0 : i32
    %c0_i32_0 = arith.constant 0 : i32
    return %arg0, %c0_i32 : i32, i32
  }
  func.func @transform_1(%arg0: i32) -> (i32, i32) {
    %c0_i32 = arith.constant 0 : i32
    %c0_i32_0 = arith.constant 0 : i32
    %c0_i32_1 = arith.constant 0 : i32
    return %c0_i32, %c0_i32_0 : i32, i32
  }
  func.func @transform_2(%arg0: i32) -> (i32, i32) {
    %c0_i32 = arith.constant 0 : i32
    %c0_i32_0 = arith.constant 0 : i32
    %c0_i32_1 = arith.constant 0 : i32
    return %c0_i32, %c0_i32_0 : i32, i32
  }
  func.func @transform_3(%arg0: i32) -> (i32, i32) {
    %c0_i32 = arith.constant 0 : i32
    %c0_i32_0 = arith.constant 0 : i32
    return %arg0, %c0_i32 : i32, i32
  }
}

</mosaic_0001>

<bundles_post_ra>
// kernel: tpu_custom_call.1
= control target key start
LH: loop header
LB: loop body
LE: loop exit
PB: predicated region body
PF: predicated region fallthrough
CT: control target
= control target key end

     0   :  { %8 = vsyncpa [#allocation3], 0  ;;  %s387_s0 = inlined_call_operand.hbm [shape: f32[16,32], index: 0, kind: input, shape index: {}]   ;;  %s388_s1 = inlined_call_operand.hbm [shape: f32[32,512], index: 1, kind: input, shape index: {}]   ;;  %s389_s2 = inlined_call_operand.hbm [shape: f32[1,512], index: 2, kind: input, shape index: {}]   ;;  %s390_s3 = inlined_call_operand.hbm [shape: f32[16,128], index: 3, kind: output, shape index: {}]  }
   0x1   :  { %9 = vsyncpa [#allocation6], 0  ;;  %s28_s14 = sshll.u32 %s388_s1, 4  ;;  %s29_s14 = int_to_ptr.hbm [resolvable:$true] %s28_s14 }
   0x2   :  { %10 = vsyncpa [#allocation4], 0  ;;  %s333_s15 = smov [#allocation5]   ;;  %s15_s19 = sshll.u32 %s387_s0, 4  ;;  %s16_s19 = int_to_ptr.hbm [resolvable:$true] %s15_s19 }
   0x3   :  { %s30_s16 = sshll.u32 %s333_s15, 4  ;;  %s334_s20 = smov 512   ;;  %s31_s16 = int_to_ptr.vmem [resolvable:$true] %s30_s16 }
   0x4   :  { %s335_s21 = smov 32   ;;  %s336_s22 = smov [#allocation2]  }
   0x5   :  { %36 = dma.hbm_to_vmem [thread:$0]  %s29_s14, 2048, %s31_s16, [#allocation6], %s334_s20, %s334_s20, %s335_s21  }
   0x6   :  { %s17_s23 = sshll.u32 %s336_s22, 4  ;;  %s337_s24 = smov 128   ;;  %s18_s23 = int_to_ptr.vmem [resolvable:$true] %s17_s23 }
   0x7   :  { %s338_s25 = smov 8   ;;  %s42_s27 = sshll.u32 %s389_s2, 4  ;;  %s43_s27 = int_to_ptr.hbm [resolvable:$true] %s42_s27 }
   0x8   :  { %23 = dma.hbm_to_vmem [thread:$0]  %s16_s19, 256, %s18_s23, [#allocation3], %s337_s24, %s337_s24, %s338_s25  }
   0x9   :  { %s339_s28 = smov [#allocation7]  }
   0xa   :  { %s44_s0 = sshll.u32 %s339_s28, 4  ;;  %s45_s0 = int_to_ptr.vmem [resolvable:$true] %s44_s0 }
   0xb   :  { %47 = dma.hbm_to_vmem [thread:$0]  %s43_s27, 64, %s45_s0, [#allocation6]  }
   0xc   :  { %327 = dma.done.wait [#allocation3], 256  }
   0xd   :  { %328 = vsyncadd [#allocation3], 4294967040 }
   0xe   :  { %329 = dma.done.wait [#allocation6], 2112  }
   0xf   :  { %330 = vsyncadd [#allocation6], 4294965184  ;;  %v76_v0 = vld [vmem:[#allocation5 + $0x70] sm:$0xff]  ;;  %v77_v2 = vld [vmem:[#allocation5 + $0x78] sm:$0xff]  ;;  %vm88_vm0 = vcmask 261120   ;;  %s340_s2 = smov [#allocation8]  }
  0x10   :  { %v72_v1 = vld [vmem:[#allocation5 + $0x50] sm:$0xff]  ;;  %153 = vmatpush.msra.mxu2 %v76_v0  ;;  %176 = vmatpush.msra.mxu3 %v77_v2  ;;  %v74_v3 = vld [vmem:[#allocation5 + $0x60] sm:$0xff]  ;;  %v75_v4 = vld [vmem:[#allocation5 + $0x68] sm:$0xff]  ;;  %s199_s29 = sshll.u32 %s340_s2, 4  ;;  %s201_s5 = sshll.u32 %s390_s3, 4  ;;  %s200_s29 = int_to_ptr.vmem [resolvable:$true] %s199_s29  ;;  %s202_s5 = int_to_ptr.hbm [resolvable:$true] %s201_s5 }
  0x11   :  { %v68_v5 = vld [vmem:[#allocation5 + $0x30] sm:$0xff]  ;;  %107 = vmatpush.msra.mxu0 %v74_v3  ;;  %130 = vmatpush.msra.mxu1 %v75_v4  ;;  %v73_v6 = vld [vmem:[#allocation5 + $0x58] sm:$0xff]  ;;  %v70_v7 = vld [vmem:[#allocation5 + $0x40] sm:$0xff] }
  0x12   :  { %v71_v8 = vld [vmem:[#allocation5 + $0x48] sm:$0xff]  ;;  %154 = vmatpush.msra.mxu2 %v72_v1  ;;  %177 = vmatpush.msra.mxu3 %v73_v6  ;;  %v64_v9 = vld [vmem:[#allocation5 + $0x10] sm:$0xff]  ;;  %v69_v10 = vld [vmem:[#allocation5 + $0x38] sm:$0xff] }
  0x13   :  { %108 = vmatpush.msra.mxu0 %v70_v7  ;;  %131 = vmatpush.msra.mxu1 %v71_v8  ;;  %v66_v11 = vld [vmem:[#allocation5 + $0x20] sm:$0xff]  ;;  %v67_v12 = vld [vmem:[#allocation5 + $0x28] sm:$0xff]  ;;  %v65_v13 = vld [vmem:[#allocation5 + $0x18] sm:$0xff] }
  0x14   :  { %155 = vmatpush.msra.mxu2 %v68_v5  ;;  %178 = vmatpush.msra.mxu3 %v69_v10  ;;  %v60_v14 = vld [vmem:[#allocation2] sm:$0xff]  ;;  %v62_v15 = vld [vmem:[#allocation5] sm:$0xff]  ;;  %v63_v16 = vld [vmem:[#allocation5 + $0x8] sm:$0xff] }
  0x15   :  { %109 = vmatpush.msra.mxu0 %v66_v11  ;;  %132 = vmatpush.msra.mxu1 %v67_v12  ;;  %v61_v17 = vld [vmem:[#allocation2 + $0x8] sm:$0xff]  ;;  %v78_v18 = vld [vmem:[#allocation7] sm:$0xf] }
  0x16   :  { %156 = vmatpush.msra.mxu2 %v64_v9  ;;  %179 = vmatpush.msra.mxu3 %v65_v13  ;;  %v80_v19 = vperm.slane %v78_v18, 0  ;;  %v81_v20 = vperm.slane %v78_v18, 1  ;;  %v82_v25 = vperm.slane %v78_v18, 2  ;;  %v83_v26 = vperm.slane %v78_v18, 3 }
  0x17   :  { %219 = vmatmul.msk.f32.vlgmr.msra.gmra.mxu2 %vm88_vm0, %v60_v14  ;;  %221 = vmatmul.msk.f32.vlgmr.msra.gmra.mxu3 %vm88_vm0, %v60_v14 }
  0x18   :  { %110 = vmatpush.msra.mxu0 %v62_v15  ;;  %133 = vmatpush.msra.mxu1 %v63_v16 }
  0x19   :  { %215 = vmatmul.msk.f32.vlgmr.msra.gmra.mxu0 %vm88_vm0, %v60_v14  ;;  %217 = vmatmul.msk.f32.vlgmr.msra.gmra.mxu1 %vm88_vm0, %v60_v14 }
  0x1f   :  { %220 = vmatmul.msk.f32.gmra.mxu2 %vm88_vm0, %v61_v17  ;;  %222 = vmatmul.msk.f32.gmra.mxu3 %vm88_vm0, %v61_v17 }
  0x21   :  { %216 = vmatmul.msk.f32.gmra.mxu0 %vm88_vm0, %v61_v17  ;;  %218 = vmatmul.msk.f32.gmra.mxu1 %vm88_vm0, %v61_v17 }
  0x96   :  { %v112_v21 = vpop.f32.mrf.mxu0  ;;  %v135_v22 = vpop.f32.mrf.mxu1 }
  0x97   :  { %v113_v23 = vadd.f32 %v112_v21, %v80_v19  ;;  %v136_v24 = vadd.f32 %v135_v22, %v81_v20 }
  0x99   :  { %v187_v27 = vmax.f32 %v113_v23, %v136_v24 }
  0x9a   :  { %v158_v28 = vpop.f32.mrf.mxu2  ;;  %v181_v29 = vpop.f32.mrf.mxu3 }
  0x9b   :  { %v159_v30 = vadd.f32 %v158_v28, %v82_v25  ;;  %v182_v31 = vadd.f32 %v181_v29, %v83_v26 }
  0x9d   :  { %v189_v32 = vmax.f32 %v187_v27, %v159_v30 }
  0x9e   :  { %v115_v33 = vpop.f32.mrf.mxu0  ;;  %v138_v34 = vpop.f32.mrf.mxu1 }
  0x9f   :  { %v191_v35 = vmax.f32 %v189_v32, %v182_v31  ;;  %v116_v36 = vadd.f32 %v115_v33, %v80_v19  ;;  %v139_v37 = vadd.f32 %v138_v34, %v81_v20 }
  0xa1   :  { %193 = vst [vmem:[#allocation8] sm:$0xff] %v191_v35  ;;  %v188_v38 = vmax.f32 %v116_v36, %v139_v37 }
  0xa2   :  { %v161_v39 = vpop.f32.mrf.mxu2  ;;  %v184_v40 = vpop.f32.mrf.mxu3 }
  0xa3   :  { %v162_v41 = vadd.f32 %v161_v39, %v82_v25  ;;  %v185_v42 = vadd.f32 %v184_v40, %v83_v26 }
  0xa5   :  { %v190_v43 = vmax.f32 %v188_v38, %v162_v41 }
  0xa7   :  { %v192_v44 = vmax.f32 %v190_v43, %v185_v42 }
  0xa9   :  { %194 = vst [vmem:[#allocation8 + $0x8] sm:$0xff] %v192_v44 }
  0xaa   :  { %207 = dma.vmem_to_hbm [thread:$0]  %s200_s29, 256, %s202_s5, [#allocation4], %s337_s24, %s337_s24, %s338_s25  }
  0xab   :  { %331 = dma.done.wait [#allocation4], 256  }
  0xac   :  { %332 = vsyncadd [#allocation4], 4294967040 }
  0xad   :  { %212 = vsyncpa [#allocation3], 1 }
  0xae   :  { %213 = vsyncpa [#allocation6], 1 }
  0xaf   :  { %214 = vsyncpa [#allocation4], 1 }

</bundles_post_ra>
